<compile_context>
chip_gen: v5e
topology: v5e:2x2
jax: 0.10.0
libtpu: 0.0.40
codegen_flags: <defaults>
</compile_context>

<pallas_src>
import functools

import jax
import jax.numpy as jnp
from jax import lax
from jax.experimental import pallas as pl
from jax.experimental.pallas import tpu as pltpu


# --------------------------------------------------------------------------
# helpers
# --------------------------------------------------------------------------
def _pad_to(n: int, mult: int) -> int:
    return ((n + mult - 1) // mult) * mult


def _vmem_budget_bytes():
    """Chip-aware VMEM budget: (tile_budget, vmem_limit_bytes)."""
    cap = 64 * 1024 * 1024                       # conservative fallback (v7x)
    try:
        info = pltpu.get_tpu_info()
        cap = int(getattr(info, "vmem_capacity_bytes", cap)) or cap
    except Exception:
        pass
    cap = max(cap, 32 * 1024 * 1024)
    limit = (cap * 3) // 4                        # leave 25% for compiler scratch
    budget = (limit * 3) // 4                     # what we size our own tiles on
    return budget, limit


def _k_tiling(m_pad: int, k: int, itemsize: int,
              n_resident_f32_blocks: int, budget: int):
    """Pick (tk, k_pad): the largest lane-aligned k tile fitting the budget."""
    fixed = n_resident_f32_blocks * m_pad * m_pad * 4   # acc / target / output
    per_col = 2 * m_pad * itemsize                       # double-buffered X slice
    avail = max(budget - fixed, 0)
    tk_max = max((avail // per_col) // 128 * 128, 128)

    k128 = _pad_to(k, 128)                       # pad only to the lane tile
    if tk_max >= k128:
        return k128, k128                        # single big block

    # Largest 128-multiple divisor of k128 that fits the budget (zero waste).
    tk = 128
    for t in range(tk_max, 127, -128):
        if k128 % t == 0:
            tk = t
            break
    # If the divisor constraint forced a tiny tile, allow modest zero-padding
    # (<= k/8 extra columns) to reclaim tile size.
    if tk < tk_max // 2:
        max_waste = k128 // 8
        for t in range(tk_max, tk, -128):
            if _pad_to(k128, t) - k128 <= max_waste:
                tk = t
                break
    return tk, _pad_to(k128, tk)


def _prep_features(feat_nchw: jax.Array, compute_dtype=None):
    """NCHW -> (m, k) with dtype handling; returns layout metadata."""
    a, b, c, d = feat_nchw.shape
    m, k = a * b, c * d
    x = feat_nchw.reshape(m, k)                  # row-major view, no copy
    if compute_dtype is not None:
        x = x.astype(compute_dtype)
    itemsize = jnp.dtype(x.dtype).itemsize
    m_mult = max(8, 32 // itemsize)              # 8 f32 / 16 bf16 / 32 int8
    m_pad = _pad_to(m, m_mult)
    scale = 1.0 / float((a * b * c * d) ** 0.5)
    return x, m, m_pad, k, itemsize, scale


def _pad_x(x: jax.Array, m_pad: int, k_pad: int) -> jax.Array:
    m, k = x.shape
    if (m_pad, k_pad) != (m, k):                 # pad only when actually needed
        x = jnp.pad(x, ((0, m_pad - m), (0, k_pad - k)))
    return x


# --------------------------------------------------------------------------
# Kernel 1: gram matrix  G = (X @ X^T) * scale     (used at "init" time)
#   grid over k-tiles; accumulate directly into the resident f32 output block.
# --------------------------------------------------------------------------
def _gram_kernel(x_ref, g_ref, *, scale):
    step = pl.program_id(0)

    @pl.when(step == 0)
    def _init():
        g_ref[...] = jnp.zeros_like(g_ref)

    x = x_ref[...]
    # Contract the last axis of both operands: X @ X^T with no transpose.
    g_ref[...] += lax.dot_general(
        x, x,
        dimension_numbers=(((1,), (1,)), ((), ())),
        preferred_element_type=jnp.float32,
    )

    @pl.when(step == pl.num_programs(0) - 1)
    def _finalize():
        g_ref[...] = g_ref[...] * scale


def _gram_padded(feat_nchw: jax.Array, compute_dtype=None):
    x, m, m_pad, k, itemsize, scale = _prep_features(feat_nchw, compute_dtype)
    budget, vmem_limit = _vmem_budget_bytes()
    tk, k_pad = _k_tiling(m_pad, k, itemsize,
                          n_resident_f32_blocks=2, budget=budget)
    x = _pad_x(x, m_pad, k_pad)

    g_pad = pl.pallas_call(
        functools.partial(_gram_kernel, scale=scale),
        out_shape=jax.ShapeDtypeStruct((m_pad, m_pad), jnp.float32),
        grid_spec=pltpu.PrefetchScalarGridSpec(
            num_scalar_prefetch=0,
            grid=(k_pad // tk,),
            in_specs=[pl.BlockSpec((m_pad, tk), lambda l: (0, l))],
            out_specs=pl.BlockSpec((m_pad, m_pad), lambda l: (0, 0)),
        ),
        compiler_params=pltpu.CompilerParams(
            dimension_semantics=("arbitrary",),
            vmem_limit_bytes=vmem_limit),
    )(x)
    return g_pad, m, m_pad


def gram_matrix(feat_nchw: jax.Array, compute_dtype=None) -> jax.Array:
    """Pallas gram matrix of an NCHW feature tensor (matches torch version)."""
    g_pad, m, _ = _gram_padded(feat_nchw, compute_dtype)
    return g_pad[:m, :m]


# --------------------------------------------------------------------------
# Kernel 2: fused forward hot path
#   acc += X_tile @ X_tile^T  over k-tiles; epilogue:
#   loss = mean((acc * scale - target)^2)   (Gram kept only in VMEM scratch)
# --------------------------------------------------------------------------
def _style_loss_kernel(x_ref, tgt_ref, loss_ref, acc_ref, *, scale, inv_n):
    step = pl.program_id(0)

    @pl.when(step == 0)
    def _init():
        acc_ref[...] = jnp.zeros_like(acc_ref)

    x = x_ref[...]
    acc_ref[...] += lax.dot_general(
        x, x,
        dimension_numbers=(((1,), (1,)), ((), ())),
        preferred_element_type=jnp.float32,
    )

    @pl.when(step == pl.num_programs(0) - 1)
    def _finalize():
        diff = acc_ref[...] * scale - tgt_ref[...]
        loss_ref[0, 0] = jnp.sum(diff * diff) * inv_n


def _style_loss_call(x, target_pad, m_pad, k_pad, tk, scale, inv_n,
                     vmem_limit, single_buffer_target):
    if single_buffer_target:
        # Constant block index: fetched once, read only in the epilogue -> a
        # single buffer is enough; frees m_pad^2*4 bytes for a larger k tile.
        tgt_spec = pl.BlockSpec((m_pad, m_pad), lambda l: (0, 0),
                                pipeline_mode=pl.Buffered(1))
    else:
        tgt_spec = pl.BlockSpec((m_pad, m_pad), lambda l: (0, 0))

    return pl.pallas_call(
        functools.partial(_style_loss_kernel, scale=scale, inv_n=inv_n),
        out_shape=jax.ShapeDtypeStruct((1, 1), jnp.float32),
        grid_spec=pltpu.PrefetchScalarGridSpec(
            num_scalar_prefetch=0,
            grid=(k_pad // tk,),
            in_specs=[
                pl.BlockSpec((m_pad, tk), lambda l: (0, l)),
                tgt_spec,
            ],
            out_specs=pl.BlockSpec((1, 1), lambda l: (0, 0)),
            scratch_shapes=[pltpu.VMEM((m_pad, m_pad), jnp.float32)],
        ),
        compiler_params=pltpu.CompilerParams(
            dimension_semantics=("arbitrary",),
            vmem_limit_bytes=vmem_limit),
    )(x, target_pad)


class StyleLossPallas:
    """JAX/Pallas port of the PyTorch StyleLoss module.

    compute_dtype: optional narrower dtype (e.g. jnp.bfloat16) for the feature
    stream; the Gram accumulation stays f32 on the MXU. Halves HBM traffic of
    the mem-bound X stream if the loss tolerance allows.
    """

    def __init__(self, target_feature: jax.Array, compute_dtype=None):
        self.compute_dtype = compute_dtype
        # target gram matrix, computed once (detached constant)
        g_pad, m, _ = _gram_padded(target_feature, compute_dtype)
        self._target_pad = g_pad          # padded (m_pad, m_pad), zeros outside
        self.target = g_pad[:m, :m]       # exposed for parity with the module
        self.loss = None
        self._single_buffer_target = True

    def __call__(self, feat_nchw: jax.Array) -> jax.Array:
        x, m, m_pad, k, itemsize, scale = _prep_features(
            feat_nchw, self.compute_dtype)
        assert self._target_pad.shape == (m_pad, m_pad), (
            "input features must match the target feature shape")

        budget, vmem_limit = _vmem_budget_bytes()
        n_resident = 2 if self._single_buffer_target else 3
        tk, k_pad = _k_tiling(m_pad, k, itemsize, n_resident, budget)
        x = _pad_x(x, m_pad, k_pad)
        inv_n = 1.0 / float(m * m)        # mean over the *unpadded* Gram

        try:
            loss = _style_loss_call(x, self._target_pad, m_pad, k_pad, tk,
                                    scale, inv_n, vmem_limit,
                                    self._single_buffer_target)
        except Exception:
            if not self._single_buffer_target:
                raise
            # Installed jax rejected pl.Buffered(1); fall back (still correct,
            # just keeps the default second buffer for the target block).
            self._single_buffer_target = False
            loss = _style_loss_call(x, self._target_pad, m_pad, k_pad, tk,
                                    scale, inv_n, vmem_limit, False)

        self.loss = loss[0, 0]
        # Like the torch module, forward returns the input unchanged.
        return feat_nchw


# --------------------------------------------------------------------------
# Reference (pure JAX) for sanity checking
# --------------------------------------------------------------------------
def _ref_gram(feat, compute_dtype=None):
    a, b, c, d = feat.shape
    x = feat.reshape(a * b, c * d)
    if compute_dtype is not None:
        x = x.astype(compute_dtype)
    x = x.astype(jnp.float32)
    return (x @ x.T) / jnp.sqrt(jnp.float32(a * b * c * d))


if __name__ == "__main__":
    key = jax.random.PRNGKey(0)
    k1, k2, k3, k4 = jax.random.split(key, 4)

    # Case 1: aligned shapes (batch, channels, H, W) -> X is (8, 256)
    target_feature = jax.random.normal(k1, (2, 4, 16, 16), dtype=jnp.float32)
    input_feature = jax.random.normal(k2, (2, 4, 16, 16), dtype=jnp.float32)

    module = StyleLossPallas(target_feature)
    out = jax.block_until_ready(module(input_feature))
    loss = jax.block_until_ready(module.loss)

    g_ref = _ref_gram(input_feature)
    t_ref = _ref_gram(target_feature)
    loss_ref = jnp.mean((g_ref - t_ref) ** 2)

    assert out.shape == input_feature.shape
    assert jnp.allclose(out, input_feature)
    assert jnp.allclose(module.target, t_ref, rtol=1e-5, atol=1e-5)
    assert jnp.allclose(loss, loss_ref, rtol=1e-5, atol=1e-5), (loss, loss_ref)

    # Case 2: unaligned shapes exercise the zero-padding path: X is (3, 100)
    target2 = jax.random.normal(k3, (1, 3, 10, 10), dtype=jnp.float32)
    input2 = jax.random.normal(k4, (1, 3, 10, 10), dtype=jnp.float32)

    module2 = StyleLossPallas(target2)
    out2 = jax.block_until_ready(module2(input2))
    loss2 = jax.block_until_ready(module2.loss)
    loss2_ref = jnp.mean((_ref_gram(input2) - _ref_gram(target2)) ** 2)

    assert out2.shape == input2.shape
    assert jnp.allclose(module2.target, _ref_gram(target2), rtol=1e-5, atol=1e-5)
    assert jnp.allclose(loss2, loss2_ref, rtol=1e-5, atol=1e-5), (loss2, loss2_ref)

    # Case 3: optional bf16 feature stream (halves HBM bytes; f32 accumulate).
    module3 = StyleLossPallas(target_feature, compute_dtype=jnp.bfloat16)
    out3 = jax.block_until_ready(module3(input_feature))
    loss3 = jax.block_until_ready(module3.loss)
    g3_ref = _ref_gram(input_feature, jnp.bfloat16)
    t3_ref = _ref_gram(target_feature, jnp.bfloat16)
    loss3_ref = jnp.mean((g3_ref - t3_ref) ** 2)

    assert out3.shape == input_feature.shape
    assert jnp.allclose(out3, input_feature)
    assert jnp.allclose(module3.target, t3_ref, rtol=1e-3, atol=1e-4)
    assert jnp.allclose(loss3, loss3_ref, rtol=1e-3, atol=1e-4), (loss3, loss3_ref)

    print("KERNEL_OK")
</pallas_src>

<mosaic_0001>
module attributes {stable_mosaic.version = 11 : i64} {
  func.func @_gram_kernel(%arg0: i32, %arg1: memref<8x256xf32, #tpu.memory_space<vmem>>, %arg2: memref<8x8xf32, #tpu.memory_space<vmem>>) attributes {dimension_semantics = [#tpu.dimension_semantics<arbitrary>], iteration_bounds = array<i64: 1>, scalar_prefetch = 0 : i64, scratch_operands = 0 : i64, tpu.core_type = #tpu.core_type<tc>, window_params = [{transform_indices = @transform_0, window_bounds = array<i64: 8, 256>}, {pipeline_mode = #tpu.pipeline_mode<synchronous>, transform_indices = @transform_1, window_bounds = array<i64: 8, 8>}]} {
    %c0_i32 = arith.constant 0 : i32
    %0 = arith.cmpi eq, %arg0, %c0_i32 : i32
    %1 = arith.extui %0 : i1 to i32
    %c0_i32_0 = arith.constant 0 : i32
    %2 = arith.cmpi ne, %1, %c0_i32_0 : i32
    scf.if %2 {
      %cst_8 = arith.constant 0.000000e+00 : f32
      %11 = vector.broadcast %cst_8 : f32 to vector<8x8xf32>
      %c0_9 = arith.constant 0 : index
      %c0_10 = arith.constant 0 : index
      %12 = vector.load %arg2[%c0_9, %c0_10] : memref<8x8xf32, #tpu.memory_space<vmem>>, vector<8x8xf32>
      tpu.vector_store %arg2[%c0_9, %c0_10], %11 {strides = array<i32>} : memref<8x8xf32, #tpu.memory_space<vmem>>, vector<8x8xf32>,
    } else {
    }
    %c0 = arith.constant 0 : index
    %c0_1 = arith.constant 0 : index
    %3 = vector.load %arg1[%c0, %c0_1] : memref<8x256xf32, #tpu.memory_space<vmem>>, vector<8x256xf32>
    %c0_2 = arith.constant 0 : index
    %c0_3 = arith.constant 0 : index
    %4 = vector.load %arg2[%c0_2, %c0_3] : memref<8x8xf32, #tpu.memory_space<vmem>>, vector<8x8xf32>
    %cst = arith.constant dense<0.000000e+00> : vector<8x8xf32>
    %5 = tpu.matmul %3, %3, %cst {dimension_numbers = #tpu.dot_dimension_numbers<[1], [1], [0], [0], [0, 0, 1, 0], [], []>} : vector<8x256xf32>, vector<8x256xf32>, vector<8x8xf32> -> vector<8x8xf32>
    %6 = arith.addf %4, %5 : vector<8x8xf32>
    %c0_4 = arith.constant 0 : index
    %c0_5 = arith.constant 0 : index
    %7 = vector.load %arg2[%c0_4, %c0_5] : memref<8x8xf32, #tpu.memory_space<vmem>>, vector<8x8xf32>
    tpu.vector_store %arg2[%c0_4, %c0_5], %6 {strides = array<i32>} : memref<8x8xf32, #tpu.memory_space<vmem>>, vector<8x8xf32>,
    %c0_i32_6 = arith.constant 0 : i32
    %8 = arith.cmpi eq, %arg0, %c0_i32_6 : i32
    %9 = arith.extui %8 : i1 to i32
    %c0_i32_7 = arith.constant 0 : i32
    %10 = arith.cmpi ne, %9, %c0_i32_7 : i32
    scf.if %10 {
      %c0_8 = arith.constant 0 : index
      %c0_9 = arith.constant 0 : index
      %11 = vector.load %arg2[%c0_8, %c0_9] : memref<8x8xf32, #tpu.memory_space<vmem>>, vector<8x8xf32>
      %cst_10 = arith.constant 0.0220970865 : f32
      %12 = vector.broadcast %cst_10 : f32 to vector<8x8xf32>
      %13 = arith.mulf %11, %12 : vector<8x8xf32>
      %c0_11 = arith.constant 0 : index
      %c0_12 = arith.constant 0 : index
      %14 = vector.load %arg2[%c0_11, %c0_12] : memref<8x8xf32, #tpu.memory_space<vmem>>, vector<8x8xf32>
      tpu.vector_store %arg2[%c0_11, %c0_12], %13 {strides = array<i32>} : memref<8x8xf32, #tpu.memory_space<vmem>>, vector<8x8xf32>,
    } else {
    }
    return
  }
  func.func @transform_0(%arg0: i32) -> (i32, i32) {
    %c0_i32 = arith.constant 0 : i32
    %c0_i32_0 = arith.constant 0 : i32
    return %c0_i32, %arg0 : i32, i32
  }
  func.func @transform_1(%arg0: i32) -> (i32, i32) {
    %c0_i32 = arith.constant 0 : i32
    %c0_i32_0 = arith.constant 0 : i32
    %c0_i32_1 = arith.constant 0 : i32
    return %c0_i32, %c0_i32_0 : i32, i32
  }
}

</mosaic_0001>

<bundles_post_ra>
// kernel: tpu_custom_call.1
= control target key start
LH: loop header
LB: loop body
LE: loop exit
PB: predicated region body
PF: predicated region fallthrough
CT: control target
= control target key end

     0   :  { %6 = vsyncpa [#allocation3], 0  ;;  %s175_s0 = inlined_call_operand.hbm [shape: f32[8,256], index: 0, kind: input, shape index: {}]   ;;  %s176_s1 = inlined_call_operand.hbm [shape: f32[8,8], index: 1, kind: output, shape index: {}]  }
   0x1   :  { %7 = vsyncpa [#allocation4], 0  ;;  %s13_s8 = sshll.u32 %s175_s0, 4  ;;  %s153_s9 = smov [#allocation2]   ;;  %s14_s8 = int_to_ptr.hbm [resolvable:$true] %s13_s8 }
   0x2   :  { %s15_s10 = sshll.u32 %s153_s9, 4  ;;  %s16_s10 = int_to_ptr.vmem [resolvable:$true] %s15_s10 }
   0x3   :  { %18 = dma.hbm_to_vmem [thread:$0]  %s14_s8, 256, %s16_s10, [#allocation3]  }
   0x4   :  { %149 = dma.done.wait [#allocation3], 256  }
   0x5   :  { %150 = vsyncadd [#allocation3], 4294967040  ;;  %v29_v0 = vld [vmem:[#allocation2] sm:$0xff]  ;;  %v30_v1 = vld [vmem:[#allocation2 + $0x8] sm:$0xff]  ;;  %vm27_vm0 = vcmask 64512   ;;  %v154_v2 = vmov 0.0  }
   0x6   :  { %47 = vmatpush.xpose.msra.mxu0 %v29_v0  ;;  %67 = vmatpush.xpose.msra.mxu1 %v30_v1  ;;  %28 = vst.msk [vmem:[#allocation5] sm:$0xff] %vm27_vm0, %v154_v2  ;;  %s155_s0 = smov [#allocation5]   ;;  %s88_s14 = sshll.u32 %s176_s1, 4  ;;  %s89_s14 = int_to_ptr.hbm [resolvable:$true] %s88_s14 }
   0x7   :  { %s86_s11 = sshll.u32 %s155_s0, 4  ;;  %s87_s11 = int_to_ptr.vmem [resolvable:$true] %s86_s11 }
   0x9   :  { %48 = vmatmul.f32.vlgmr.msra.gmra.mxu0 %v29_v0  ;;  %68 = vmatmul.f32.vlgmr.msra.gmra.mxu1 %v30_v1 }
   0xd   :  { %v31_v4 = vld [vmem:[#allocation5] sm:$0xff] }
  0x86   :  { %v49_v3 = vpop.f32.mrf.mxu0  ;;  %v69_v5 = vpop.f32.mrf.mxu1 }
  0x87   :  { %v70_v6 = vadd.f32 %v69_v5, %v49_v3 }
  0x89   :  { %v72_v7 = vadd.f32 %v70_v6, %v31_v4 }
  0x8b   :  { %74 = vst.msk [vmem:[#allocation5] sm:$0xff] %vm27_vm0, %v72_v7 }
  0x92   :  { %v78_v8 = vld [vmem:[#allocation5] sm:$0xff] }
  0x93   :  { %v79_v9 = vmul.f32 0.022097087, %v78_v8 }
  0x95   :  { %80 = vst.msk [vmem:[#allocation5] sm:$0xff] %vm27_vm0, %v79_v9 }
  0x96   :  { %91 = dma.vmem_to_hbm [thread:$0]  %s87_s11, 128, %s89_s14, [#allocation4]  }
  0x97   :  { %151 = dma.done.wait [#allocation4], 128  }
  0x98   :  { %152 = vsyncadd [#allocation4], 4294967168 }
  0x99   :  { %96 = vsyncpa [#allocation3], 1 }
  0x9a   :  { %97 = vsyncpa [#allocation4], 1 }

</bundles_post_ra>
